<compile_context>
chip_gen: v7x
topology: tpu7x:2x2x1
jax: 0.10.0
libtpu: 0.0.40
codegen_flags: <defaults>
</compile_context>

<pallas_src>
import functools

import jax
import jax.numpy as jnp
import numpy as np
from jax.experimental import pallas as pl
from jax.experimental.pallas import tpu as pltpu

TILE_M = 128  # row tile for the fused matmul / pooling kernels


def _round_up(x, m):
    return ((x + m - 1) // m) * m


# --------------------------------------------------------------------------
# Kernel 1: fused  (X @ W) * scale + shift  [+ residual]  [+ ReLU]
# --------------------------------------------------------------------------
def _fused_matmul_kernel(x_ref, w_ref, scale_ref, shift_ref, *rest,
                         relu, has_residual):
    if has_residual:
        res_ref, out_ref = rest
    else:
        (out_ref,) = rest
    acc = jnp.dot(x_ref[...], w_ref[...], preferred_element_type=jnp.float32)
    acc = acc * scale_ref[...] + shift_ref[...]
    if has_residual:
        acc = acc + res_ref[...]
    if relu:
        acc = jnp.maximum(acc, 0.0)
    out_ref[...] = acc


def fused_matmul(x, w, scale, shift, *, residual=None, relu=True,
                 tile_m=TILE_M):
    """x: (M, K), w: (K, N), scale/shift: (1, N), residual: (M, N) or None."""
    M, K = x.shape
    Nout = w.shape[1]
    M_pad = _round_up(max(M, 1), tile_m)
    if M_pad != M:
        x = jnp.pad(x, ((0, M_pad - M), (0, 0)))
        if residual is not None:
            residual = jnp.pad(residual, ((0, M_pad - M), (0, 0)))

    grid = (M_pad // tile_m,)
    in_specs = [
        pl.BlockSpec((tile_m, K), lambda i: (i, 0)),
        pl.BlockSpec((K, Nout), lambda i: (0, 0)),
        pl.BlockSpec((1, Nout), lambda i: (0, 0)),
        pl.BlockSpec((1, Nout), lambda i: (0, 0)),
    ]
    inputs = [x, w, scale, shift]
    if residual is not None:
        in_specs.append(pl.BlockSpec((tile_m, Nout), lambda i: (i, 0)))
        inputs.append(residual)

    flops = 2 * M_pad * K * Nout + 3 * M_pad * Nout
    bytes_accessed = 4 * (M_pad * K + K * Nout + 2 * Nout + M_pad * Nout
                          + (M_pad * Nout if residual is not None else 0))

    out = pl.pallas_call(
        functools.partial(_fused_matmul_kernel, relu=relu,
                          has_residual=residual is not None),
        out_shape=jax.ShapeDtypeStruct((M_pad, Nout), jnp.float32),
        grid=grid,
        in_specs=in_specs,
        out_specs=pl.BlockSpec((tile_m, Nout), lambda i: (i, 0)),
        compiler_params=pltpu.CompilerParams(
            dimension_semantics=("parallel",),
            vmem_limit_bytes=32 * 1024 * 1024),
        cost_estimate=pl.CostEstimate(flops=flops, transcendentals=0,
                                      bytes_accessed=bytes_accessed),
    )(*inputs)
    return out[:M]


# --------------------------------------------------------------------------
# Kernel 2: 2x2 average pooling (stride 2)
# --------------------------------------------------------------------------
def _avgpool_kernel(a_ref, b_ref, c_ref, d_ref, o_ref):
    o_ref[...] = (a_ref[...] + b_ref[...] + c_ref[...] + d_ref[...]) * 0.25


def avgpool2x2(x):
    """x: (N, H, W, C) NHWC, H and W even."""
    N, H, W, C = x.shape
    Ho, Wo = H // 2, W // 2
    a = x[:, 0::2, 0::2, :].reshape(-1, C)
    b = x[:, 0::2, 1::2, :].reshape(-1, C)
    c = x[:, 1::2, 0::2, :].reshape(-1, C)
    d = x[:, 1::2, 1::2, :].reshape(-1, C)
    M = a.shape[0]
    M_pad = _round_up(M, TILE_M)
    if M_pad != M:
        pad = ((0, M_pad - M), (0, 0))
        a, b, c, d = (jnp.pad(t, pad) for t in (a, b, c, d))
    spec = pl.BlockSpec((TILE_M, C), lambda i: (i, 0))
    out = pl.pallas_call(
        _avgpool_kernel,
        out_shape=jax.ShapeDtypeStruct((M_pad, C), jnp.float32),
        grid=(M_pad // TILE_M,),
        in_specs=[spec] * 4,
        out_specs=spec,
        compiler_params=pltpu.CompilerParams(
            dimension_semantics=("parallel",)),
    )(a, b, c, d)
    return out[:M].reshape(N, Ho, Wo, C)


# --------------------------------------------------------------------------
# Kernel 3: AttentionPool2d (q0-only attention + output projection)
# --------------------------------------------------------------------------
def _attnpool_kernel(tok_ref, qw_ref, qb_ref, kw_ref, kb_ref, vw_ref, vb_ref,
                     cw_ref, cb_ref, o_ref, *, num_heads):
    toks = tok_ref[0]                                   # (L, C)
    C = toks.shape[1]
    hd = C // num_heads
    q0 = jnp.dot(toks[0:1], qw_ref[...],
                 preferred_element_type=jnp.float32) + qb_ref[...]   # (1, C)
    k = jnp.dot(toks, kw_ref[...],
                preferred_element_type=jnp.float32) + kb_ref[...]    # (L, C)
    v = jnp.dot(toks, vw_ref[...],
                preferred_element_type=jnp.float32) + vb_ref[...]    # (L, C)
    scale = 1.0 / float(np.sqrt(hd))
    heads_out = []
    for h in range(num_heads):
        sl = slice(h * hd, (h + 1) * hd)
        qh = q0[:, sl] * scale                          # (1, hd)
        kh = k[:, sl]                                   # (L, hd)
        vh = v[:, sl]                                   # (L, hd)
        # q0 . K^T without an explicit transpose: contract the hd axis of both.
        s = jax.lax.dot_general(qh, kh, (((1,), (1,)), ((), ())),
                                preferred_element_type=jnp.float32)  # (1, L)
        s = s - jnp.max(s, axis=-1, keepdims=True)
        e = jnp.exp(s)
        p = e / jnp.sum(e, axis=-1, keepdims=True)
        heads_out.append(jnp.dot(p, vh,
                                 preferred_element_type=jnp.float32))  # (1, hd)
    attn = jnp.concatenate(heads_out, axis=-1)          # (1, C)
    out = jnp.dot(attn, cw_ref[...],
                  preferred_element_type=jnp.float32) + cb_ref[...]   # (1, Dout)
    o_ref[0] = out


def attnpool_forward(x, p, num_heads):
    """x: (N, H, W, C). Returns (N, output_dim)."""
    N, H, W, C = x.shape
    HW = H * W
    L = HW + 1
    output_dim = p["cw"].shape[1]
    # Token assembly (mean token + positional embedding) is layout plumbing
    # done in the wrapper; all attention compute lives in the kernel.
    xt = x.reshape(N, HW, C)
    mean_tok = jnp.mean(xt, axis=1, keepdims=True)          # (N, 1, C)
    toks = jnp.concatenate([mean_tok, xt], axis=1) + p["pos"][None]  # (N, L, C)

    def full_spec(arr):
        nd = arr.ndim
        return pl.BlockSpec(arr.shape, lambda b, _nd=nd: (0,) * _nd)

    weight_keys = ("qw", "qb", "kw", "kb", "vw", "vb", "cw", "cb")
    in_specs = [pl.BlockSpec((1, L, C), lambda b: (b, 0, 0))]
    in_specs += [full_spec(p[k]) for k in weight_keys]

    out = pl.pallas_call(
        functools.partial(_attnpool_kernel, num_heads=num_heads),
        out_shape=jax.ShapeDtypeStruct((N, 1, output_dim), jnp.float32),
        grid=(N,),
        in_specs=in_specs,
        out_specs=pl.BlockSpec((1, 1, output_dim), lambda b: (b, 0, 0)),
        compiler_params=pltpu.CompilerParams(
            dimension_semantics=("parallel",),
            vmem_limit_bytes=32 * 1024 * 1024),
    )(toks, *[p[k] for k in weight_keys])
    return out.reshape(N, output_dim)


# --------------------------------------------------------------------------
# Conv / Bottleneck plumbing (im2col in the wrapper, compute in Pallas)
# --------------------------------------------------------------------------
def _im2col3x3(x, stride):
    """x: (N, H, W, C), padding=1. Returns ((N, Ho, Wo, 9*C), Ho, Wo)."""
    N, H, W, C = x.shape
    Ho = (H + 2 - 3) // stride + 1
    Wo = (W + 2 - 3) // stride + 1
    xp = jnp.pad(x, ((0, 0), (1, 1), (1, 1), (0, 0)))
    cols = []
    for dh in range(3):
        for dw in range(3):
            cols.append(xp[:, dh:dh + (Ho - 1) * stride + 1:stride,
                           dw:dw + (Wo - 1) * stride + 1:stride, :])
    return jnp.concatenate(cols, axis=-1), Ho, Wo


def conv_bn(x, p, *, stride=1, relu=True, residual=None):
    """Conv (no bias) + folded BN (+ residual) (+ ReLU), NHWC."""
    kh, kw, cin, cout = p["w"].shape
    N = x.shape[0]
    if kh == 1 and kw == 1 and stride == 1:
        Ho, Wo = x.shape[1], x.shape[2]
        cols = x.reshape(-1, cin)
    else:
        cols, Ho, Wo = _im2col3x3(x, stride)
        cols = cols.reshape(-1, kh * kw * cin)
    wf = p["w"].reshape(kh * kw * cin, cout)
    res = None if residual is None else residual.reshape(-1, cout)
    out = fused_matmul(cols, wf, p["scale"], p["shift"],
                       residual=res, relu=relu)
    return out.reshape(N, Ho, Wo, cout)


def bottleneck_forward(x, p):
    out = conv_bn(x, p["conv1"], relu=True)
    out = conv_bn(out, p["conv2"], relu=True)
    if p["stride"] > 1:
        out = avgpool2x2(out)
    if p["downsample"] is not None:
        idn = avgpool2x2(x) if p["stride"] > 1 else x
        idn = conv_bn(idn, p["downsample"], relu=False)
    else:
        idn = x
    # conv3 + bn3 + residual add + final ReLU fused in one kernel pass.
    return conv_bn(out, p["conv3"], relu=True, residual=idn)


def forward_pallas(x_nchw, params, num_heads):
    x = jnp.transpose(x_nchw, (0, 2, 3, 1))          # NCHW -> NHWC
    x = conv_bn(x, params["conv1"], stride=2)
    x = conv_bn(x, params["conv2"])
    x = conv_bn(x, params["conv3"])
    x = avgpool2x2(x)
    for layer in params["layers"]:
        for blk in layer:
            x = bottleneck_forward(x, blk)
    return attnpool_forward(x, params["attnpool"], num_heads)


# --------------------------------------------------------------------------
# Parameter construction (deterministic)
# --------------------------------------------------------------------------
def make_conv_bn(key, kh, kw, cin, cout):
    k1, k2, k3, k4, k5 = jax.random.split(key, 5)
    fan_in = kh * kw * cin
    w = jax.random.normal(k1, (kh, kw, cin, cout), jnp.float32) * np.sqrt(2.0 / fan_in)
    gamma = jax.random.uniform(k2, (cout,), jnp.float32, 0.5, 1.5)
    beta = 0.1 * jax.random.normal(k3, (cout,), jnp.float32)
    mean = 0.1 * jax.random.normal(k4, (cout,), jnp.float32)
    var = jax.random.uniform(k5, (cout,), jnp.float32, 0.5, 1.5)
    eps = 1e-5
    scale = gamma / jnp.sqrt(var + eps)
    shift = beta - mean * scale
    return {"w": w, "scale": scale.reshape(1, cout), "shift": shift.reshape(1, cout)}


def make_bottleneck(key, inplanes, planes, stride):
    ks = jax.random.split(key, 4)
    p = {
        "stride": stride,
        "conv1": make_conv_bn(ks[0], 1, 1, inplanes, planes),
        "conv2": make_conv_bn(ks[1], 3, 3, planes, planes),
        "conv3": make_conv_bn(ks[2], 1, 1, planes, planes * 4),
        "downsample": None,
    }
    if stride > 1 or inplanes != planes * 4:
        p["downsample"] = make_conv_bn(ks[3], 1, 1, inplanes, planes * 4)
    return p


def make_attnpool(key, spacial_dim, embed_dim, output_dim):
    ks = jax.random.split(key, 9)
    L = spacial_dim ** 2 + 1
    std = embed_dim ** (-0.5)
    pos = jax.random.normal(ks[0], (L, embed_dim), jnp.float32) * std

    def lin(kw_, kb_, din, dout):
        w = jax.random.normal(kw_, (din, dout), jnp.float32) * std
        b = 0.02 * jax.random.normal(kb_, (1, dout), jnp.float32)
        return w, b

    qw, qb = lin(ks[1], ks[2], embed_dim, embed_dim)
    kw, kb = lin(ks[3], ks[4], embed_dim, embed_dim)
    vw, vb = lin(ks[5], ks[6], embed_dim, embed_dim)
    cw, cb = lin(ks[7], ks[8], embed_dim, output_dim)
    return dict(pos=pos, qw=qw, qb=qb, kw=kw, kb=kb, vw=vw, vb=vb, cw=cw, cb=cb)


def make_params(key, layers_cfg, width, image_size, output_dim):
    ks = jax.random.split(key, 8)
    params = {
        "conv1": make_conv_bn(ks[0], 3, 3, 3, width // 2),
        "conv2": make_conv_bn(ks[1], 3, 3, width // 2, width // 2),
        "conv3": make_conv_bn(ks[2], 3, 3, width // 2, width),
    }
    inplanes = width
    layer_params = []
    for li, (blocks, stride) in enumerate(zip(layers_cfg, (1, 2, 2, 2))):
        planes = width * (2 ** li)
        kl = jax.random.split(ks[3 + li], blocks)
        blks = []
        for bi in range(blocks):
            s = stride if bi == 0 else 1
            blks.append(make_bottleneck(kl[bi], inplanes, planes, s))
            inplanes = planes * 4
        layer_params.append(blks)
    params["layers"] = layer_params
    embed_dim = width * 32
    params["attnpool"] = make_attnpool(ks[7], image_size // 32, embed_dim, output_dim)
    return params


# --------------------------------------------------------------------------
# Pure-JAX reference (independent path: lax.conv, full multi-head attention)
# --------------------------------------------------------------------------
def reference_forward(x_nchw, params, num_heads):
    P = jax.lax.Precision.HIGHEST
    x = jnp.transpose(x_nchw, (0, 2, 3, 1))

    def conv(x, w, stride, pad):
        return jax.lax.conv_general_dilated(
            x, w, (stride, stride), ((pad, pad), (pad, pad)),
            dimension_numbers=("NHWC", "HWIO", "NHWC"), precision=P)

    def cbn(x, p, stride=1, relu=True):
        kh = p["w"].shape[0]
        pad = (kh - 1) // 2
        y = conv(x, p["w"], stride, pad)
        y = y * p["scale"][0] + p["shift"][0]
        return jnp.maximum(y, 0.0) if relu else y

    def pool(x):
        N, H, W, C = x.shape
        return x.reshape(N, H // 2, 2, W // 2, 2, C).mean(axis=(2, 4))

    x = cbn(x, params["conv1"], stride=2)
    x = cbn(x, params["conv2"])
    x = cbn(x, params["conv3"])
    x = pool(x)
    for layer in params["layers"]:
        for p in layer:
            out = cbn(x, p["conv1"])
            out = cbn(out, p["conv2"])
            if p["stride"] > 1:
                out = pool(out)
            out = cbn(out, p["conv3"], relu=False)
            if p["downsample"] is not None:
                idn = pool(x) if p["stride"] > 1 else x
                idn = cbn(idn, p["downsample"], relu=False)
            else:
                idn = x
            x = jnp.maximum(out + idn, 0.0)

    ap = params["attnpool"]
    N, H, W, C = x.shape
    xt = x.reshape(N, H * W, C)
    toks = jnp.concatenate([xt.mean(axis=1, keepdims=True), xt], axis=1) + ap["pos"][None]
    L = toks.shape[1]
    hd = C // num_heads

    def proj(t, w, b):
        return jnp.einsum("nlc,cd->nld", t, w, precision=P) + b[0]

    q = proj(toks, ap["qw"], ap["qb"]) / np.sqrt(hd)
    k = proj(toks, ap["kw"], ap["kb"])
    v = proj(toks, ap["vw"], ap["vb"])
    q = q.reshape(N, L, num_heads, hd)
    k = k.reshape(N, L, num_heads, hd)
    v = v.reshape(N, L, num_heads, hd)
    s = jnp.einsum("nqhd,nkhd->nhqk", q, k, precision=P)
    pattn = jax.nn.softmax(s, axis=-1)
    o = jnp.einsum("nhqk,nkhd->nqhd", pattn, v, precision=P).reshape(N, L, C)
    out = jnp.einsum("nlc,cd->nld", o, ap["cw"], precision=P) + ap["cb"][0]
    return out[:, 0, :]


# --------------------------------------------------------------------------
if __name__ == "__main__":
    # Small config consistent with the module: layers=(2,1,1,1), width=16,
    # image_size=64 -> embed_dim=512, spacial_dim=2 (5 tokens), heads=4
    # (head_dim=128, lane-aligned), output_dim=128 (lane-dense output).
    layers_cfg = (2, 1, 1, 1)
    width = 16
    image_size = 64
    heads = 4
    output_dim = 128
    batch = 2

    key = jax.random.PRNGKey(0)
    k_in, k_par = jax.random.split(key)
    x = jax.random.normal(k_in, (batch, 3, image_size, image_size), jnp.float32)

    params = make_params(k_par, layers_cfg, width, image_size, output_dim)

    out = forward_pallas(x, params, heads)
    out = jax.block_until_ready(out)
    assert out.shape == (batch, output_dim)

    ref = reference_forward(x, params, heads)
    np.testing.assert_allclose(np.asarray(out), np.asarray(ref),
                               rtol=5e-3, atol=5e-3)
    print("KERNEL_OK")
</pallas_src>

<mosaic_0001>
module attributes {stable_mosaic.version = 11 : i64} {
  func.func @_fused_matmul_kernel(%arg0: i32, %arg1: memref<128x27xf32, #tpu.memory_space<vmem>>, %arg2: memref<27x8xf32, #tpu.memory_space<vmem>>, %arg3: memref<1x8xf32, #tpu.memory_space<vmem>>, %arg4: memref<1x8xf32, #tpu.memory_space<vmem>>, %arg5: memref<128x8xf32, #tpu.memory_space<vmem>>) attributes {dimension_semantics = [#tpu.dimension_semantics<parallel>], iteration_bounds = array<i64: 16>, scalar_prefetch = 0 : i64, scratch_operands = 0 : i64, tpu.core_type = #tpu.core_type<tc>, window_params = [{transform_indices = @transform_0, window_bounds = array<i64: 128, 27>}, {pipeline_mode = #tpu.pipeline_mode<synchronous>, transform_indices = @transform_1, window_bounds = array<i64: 27, 8>}, {pipeline_mode = #tpu.pipeline_mode<synchronous>, transform_indices = @transform_2, window_bounds = array<i64: 1, 8>}, {pipeline_mode = #tpu.pipeline_mode<synchronous>, transform_indices = @transform_3, window_bounds = array<i64: 1, 8>}, {transform_indices = @transform_4, window_bounds = array<i64: 128, 8>}]} {
    %c0 = arith.constant 0 : index
    %c0_0 = arith.constant 0 : index
    %0 = vector.load %arg1[%c0, %c0_0] : memref<128x27xf32, #tpu.memory_space<vmem>>, vector<128x27xf32>
    %c0_1 = arith.constant 0 : index
    %c0_2 = arith.constant 0 : index
    %1 = vector.load %arg2[%c0_1, %c0_2] : memref<27x8xf32, #tpu.memory_space<vmem>>, vector<27x8xf32>
    %cst = arith.constant dense<0.000000e+00> : vector<128x8xf32>
    %2 = tpu.matmul %0, %1, %cst {dimension_numbers = #tpu.dot_dimension_numbers<[1], [0], [0], [1], [0, 0, 1, 1], [], []>} : vector<128x27xf32>, vector<27x8xf32>, vector<128x8xf32> -> vector<128x8xf32>
    %c0_3 = arith.constant 0 : index
    %c0_4 = arith.constant 0 : index
    %3 = vector.load %arg3[%c0_3, %c0_4] : memref<1x8xf32, #tpu.memory_space<vmem>>, vector<1x8xf32>
    %4 = vector.broadcast %3 : vector<1x8xf32> to vector<128x8xf32>
    %5 = arith.mulf %2, %4 : vector<128x8xf32>
    %c0_5 = arith.constant 0 : index
    %c0_6 = arith.constant 0 : index
    %6 = vector.load %arg4[%c0_5, %c0_6] : memref<1x8xf32, #tpu.memory_space<vmem>>, vector<1x8xf32>
    %7 = vector.broadcast %6 : vector<1x8xf32> to vector<128x8xf32>
    %8 = arith.addf %5, %7 : vector<128x8xf32>
    %cst_7 = arith.constant 0.000000e+00 : f32
    %9 = vector.broadcast %cst_7 : f32 to vector<128x8xf32>
    %10 = arith.maximumf %8, %9 : vector<128x8xf32>
    %c0_8 = arith.constant 0 : index
    %c0_9 = arith.constant 0 : index
    %11 = vector.load %arg5[%c0_8, %c0_9] : memref<128x8xf32, #tpu.memory_space<vmem>>, vector<128x8xf32>
    tpu.vector_store %arg5[%c0_8, %c0_9], %10 {strides = array<i32>} : memref<128x8xf32, #tpu.memory_space<vmem>>, vector<128x8xf32>,
    return
  }
  func.func @transform_0(%arg0: i32) -> (i32, i32) {
    %c0_i32 = arith.constant 0 : i32
    %c0_i32_0 = arith.constant 0 : i32
    return %arg0, %c0_i32 : i32, i32
  }
  func.func @transform_1(%arg0: i32) -> (i32, i32) {
    %c0_i32 = arith.constant 0 : i32
    %c0_i32_0 = arith.constant 0 : i32
    %c0_i32_1 = arith.constant 0 : i32
    return %c0_i32, %c0_i32_0 : i32, i32
  }
  func.func @transform_2(%arg0: i32) -> (i32, i32) {
    %c0_i32 = arith.constant 0 : i32
    %c0_i32_0 = arith.constant 0 : i32
    %c0_i32_1 = arith.constant 0 : i32
    return %c0_i32, %c0_i32_0 : i32, i32
  }
  func.func @transform_3(%arg0: i32) -> (i32, i32) {
    %c0_i32 = arith.constant 0 : i32
    %c0_i32_0 = arith.constant 0 : i32
    %c0_i32_1 = arith.constant 0 : i32
    return %c0_i32, %c0_i32_0 : i32, i32
  }
  func.func @transform_4(%arg0: i32) -> (i32, i32) {
    %c0_i32 = arith.constant 0 : i32
    %c0_i32_0 = arith.constant 0 : i32
    return %arg0, %c0_i32 : i32, i32
  }
}

</mosaic_0001>

<bundles_post_ra>
// kernel: tpu_custom_call.1
= control target key start
LH: loop header
LB: loop body
LE: loop exit
PB: predicated region body
PF: predicated region fallthrough
CT: control target
= control target key end

     0   :  { %s693_s15 = smov 0   ;;  %s839_s0 = inlined_call_operand.vmem [shape: f32[2048,27], index: 0, kind: input, shape index: {}]   ;;  %s840_s1 = inlined_call_operand.vmem [shape: f32[27,8], index: 1, kind: input, shape index: {}]   ;;  %s841_s2 = inlined_call_operand.vmem [shape: f32[1,8], index: 2, kind: input, shape index: {}]   ;;  %s842_s3 = inlined_call_operand.vmem [shape: f32[1,8], index: 3, kind: input, shape index: {}]   ;;  %s843_s4 = inlined_call_operand.vmem [shape: f32[2048,8], index: 4, kind: output, shape index: {}]  }
   0x1 LB: > { %s554_s16 = sadd.s32 4294967295, %s665_s15   ;;  %p558_p0 = scmp.ge.s32.totalorder %s665_s15, 1  ;;  %s665_s15 = sphi %s693_s15, %s14_s15  }
   0x2   : > { %p163_p1 = scmp.lt.s32.totalorder %s665_s15, 17 }
   0x4   : > { %p164_p2 = pnand %p558_p0, %p163_p1 }
   0x5   : > { %v217_v0 = vld [vmem:[%s840_s1] sm:$0xff] (!%p164_p2)  ;;  %v218_v1 = vld [vmem:[%s840_s1 + $0x8] sm:$0xff] (!%p164_p2)  ;;  %v219_v2 = vld [vmem:[%s840_s1 + $0x10] sm:$0xff] (!%p164_p2)  ;;  %vm270_vm0 = vcmask (!%p164_p2), 1042432   ;;  %s559_s23 = sshll.u32 (!%p164_p2), %s554_s16, 4  ;;  %vm667_vm1 = vmmov (!%p164_p2), 1  }
   0x6   : > { %167 = sbr.rel (%p164_p2) target bundleno = 251 (0xfb), region = 36  ;;  %v636_v3 = vpack.c.bf16 (!%p164_p2), %v218_v1, %v217_v0  ;;  %v220_v4 = vld [vmem:[%s840_s1 + $0x18] sm:$0x7] (!%p164_p2)  ;;  %p190_p3 = scmp.lt.s32.totalorder (!%p164_p2), %s559_s23, 255  ;;  %vm641_vm2 = vmpackc.low (!%p164_p2), %vm270_vm0, %vm667_vm1  ;;  %vm221_vm3 = vcmask (!%p164_p2), 220160   ;;  %vm481_vm4 = vcmask (!%p164_p2), 64512  }
   0x7   : > { %v640_v5 = vpack.c.bf16 (!%p164_p2), %v220_v4, %v219_v2  ;;  %v758_v22 = vld [vmem:[%s841_s2] ss:$0 sm:$0xff] (!%p164_p2) }
   0x8   : > { %637 = vmatprep.subr.bf16.mxu0 (!%p164_p2), %v636_v3  ;;  %646 = vmatprep.subr.bf16.mxu1 (!%p164_p2), %v636_v3  ;;  %v763_v24 = vld [vmem:[%s842_s3] ss:$0 sm:$0xff] (!%p164_p2) }
   0x9   : > { %639 = vmatpush3.bf16.msra.mxu0 (!%p164_p2), %v636_v3  ;;  %648 = vmatpush3.bf16.msra.mxu1 (!%p164_p2), %v636_v3 }
   0xa   : > { %642 = vmatprep.subr.msk.bf16.mxu0 (!%p164_p2), %vm641_vm2, %v640_v5  ;;  %647 = vmatprep.subr.msk.bf16.mxu1 (!%p164_p2), %vm641_vm2, %v640_v5 }
   0xd   : > { %s845_s23 = smov (!%p190_p3, %s559_s23), 255  ;;  %645 = vmatpush3.bf16.msk.msra.mxu0 %vm641_vm2, %v640_v5  ;;  %649 = vmatpush3.bf16.msk.msra.mxu1 %vm641_vm2, %v640_v5 }
   0xe   : > { %s560_s26 = sshll.u32 %s845_s23, 3 }
   0xf   : > { %s721_s29 = scalar_lea.vmem %s839_s0, %s560_s26  ;;  %s776_s10 = scalar_lea.vmem %s843_s4, %s560_s26 }
  0x10   : > { %v201_v6 = vld [vmem:[%s721_s29] sm:$0xff]  ;;  %v202_v8 = vld [vmem:[%s721_s29 + $0x8] sm:$0xff]  ;;  %v203_v10 = vld [vmem:[%s721_s29 + $0x10] sm:$0xff] }
  0x11   : > { %v209_v7 = vld [vmem:[%s721_s29 + $0x40] sm:$0xff]  ;;  %v210_v9 = vld [vmem:[%s721_s29 + $0x48] sm:$0xff]  ;;  %612 = vmatprep.mubr.msk.f32.mxu0 %vm221_vm3, %v201_v6  ;;  %v211_v11 = vld [vmem:[%s721_s29 + $0x50] sm:$0xff] }
  0x12   : > { %624 = vmatprep.mubr.msk.f32.mxu1 %vm221_vm3, %v209_v7  ;;  %613 = vmatmul.mubr.msk.f32.vlgmr.msra.gmra.mrb[0].mxu0 %vm221_vm3, %v202_v8  ;;  %v204_v12 = vld [vmem:[%s721_s29 + $0x18] sm:$0xff]  ;;  %v205_v14 = vld [vmem:[%s721_s29 + $0x20] sm:$0xff]  ;;  %v206_v16 = vld [vmem:[%s721_s29 + $0x28] sm:$0xff] }
  0x13   : > { %625 = vmatmul.mubr.msk.f32.vlgmr.msra.gmra.mrb[0].mxu1 %vm221_vm3, %v210_v9  ;;  %615 = vmatprep.mubr.msk.f32.mxu0 %vm221_vm3, %v203_v10  ;;  %v212_v13 = vld [vmem:[%s721_s29 + $0x58] sm:$0xff]  ;;  %v213_v15 = vld [vmem:[%s721_s29 + $0x60] sm:$0xff]  ;;  %v214_v17 = vld [vmem:[%s721_s29 + $0x68] sm:$0xff] }
  0x14   : > { %627 = vmatprep.mubr.msk.f32.mxu1 %vm221_vm3, %v211_v11  ;;  %v207_v18 = vld [vmem:[%s721_s29 + $0x30] sm:$0xff]  ;;  %v208_v20 = vld [vmem:[%s721_s29 + $0x38] sm:$0xff] }
  0x15   : > { %v215_v19 = vld [vmem:[%s721_s29 + $0x70] sm:$0xff]  ;;  %v216_v21 = vld [vmem:[%s721_s29 + $0x78] sm:$0xff] }
  0x16   : > { %616 = vmatmul.mubr.msk.f32.gmra.mrb[2].mxu0 %vm221_vm3, %v204_v12 }
  0x17   : > { %628 = vmatmul.mubr.msk.f32.gmra.mrb[2].mxu1 %vm221_vm3, %v212_v13  ;;  %618 = vmatprep.mubr.msk.f32.mxu0 %vm221_vm3, %v205_v14 }
  0x18   : > { %630 = vmatprep.mubr.msk.f32.mxu1 %vm221_vm3, %v213_v15 }
  0x1a   : > { %619 = vmatmul.mubr.msk.f32.gmra.mrb[4].mxu0 %vm221_vm3, %v206_v16 }
  0x1b   : > { %631 = vmatmul.mubr.msk.f32.gmra.mrb[4].mxu1 %vm221_vm3, %v214_v17  ;;  %621 = vmatprep.mubr.msk.f32.mxu0 %vm221_vm3, %v207_v18 }
  0x1c   : > { %633 = vmatprep.mubr.msk.f32.mxu1 %vm221_vm3, %v215_v19 }
  0x1e   : > { %622 = vmatmul.mubr.msk.f32.gmra.mrb[6].mxu0 %vm221_vm3, %v208_v20 }
  0x1f   : > { %634 = vmatmul.mubr.msk.f32.gmra.mrb[6].mxu1 %vm221_vm3, %v216_v21 }
  0xe5   : > { %v614_v23 = vpop.f32.mrb[0].mxu0 }
  0xe6   : > { %v626_v25 = vpop.f32.mrb[0].mxu1  ;;  %v427_v26 = vmul.f32 %v614_v23, %v758_v22  ;;  %v340_v28 = vpop.f32.mrb[1].mxu0 }
  0xe7   : > { %v435_v27 = vmul.f32 %v626_v25, %v758_v22  ;;  %v380_v29 = vpop.f32.mrb[1].mxu1  ;;  %v426_v30 = vmul.f32 %v758_v22, %v340_v28 }
  0xe8   : > { %v434_v31 = vmul.f32 %v758_v22, %v380_v29  ;;  %v450_v32 = vadd.f32 %v763_v24, %v427_v26 }
  0xe9   : > { %v458_v33 = vadd.f32 %v763_v24, %v435_v27  ;;  %v449_v34 = vadd.f32 %v763_v24, %v426_v30  ;;  %v617_v36 = vpop.f32.mrb[2].mxu0 }
  0xea   : > { %v457_v35 = vadd.f32 %v763_v24, %v434_v31  ;;  %v629_v37 = vpop.f32.mrb[2].mxu1  ;;  %v466_v38 = vmax.f32 %v450_v32, 0.0  ;;  %v429_v40 = vmul.f32 %v617_v36, %v758_v22  ;;  %v350_v42 = vpop.f32.mrb[3].mxu0 }
  0xeb   : > { %v474_v39 = vmax.f32 %v458_v33, 0.0  ;;  %v437_v41 = vmul.f32 %v629_v37, %v758_v22  ;;  %v390_v43 = vpop.f32.mrb[3].mxu1  ;;  %v465_v44 = vmax.f32 %v449_v34, 0.0  ;;  %v428_v46 = vmul.f32 %v758_v22, %v350_v42 }
  0xec   : > { %v473_v45 = vmax.f32 %v457_v35, 0.0  ;;  %v436_v47 = vmul.f32 %v758_v22, %v390_v43  ;;  %483 = vst.msk [vmem:[%s776_s10 + $0x8] sm:$0xff] %vm481_vm4, %v466_v38  ;;  %v452_v48 = vadd.f32 %v763_v24, %v429_v40 }
  0xed   : > { %491 = vst.msk [vmem:[%s776_s10 + $0x48] sm:$0xff] %vm481_vm4, %v474_v39  ;;  %v460_v49 = vadd.f32 %v763_v24, %v437_v41  ;;  %482 = vst.msk [vmem:[%s776_s10] sm:$0xff] %vm481_vm4, %v465_v44  ;;  %v451_v50 = vadd.f32 %v763_v24, %v428_v46  ;;  %v620_v52 = vpop.f32.mrb[4].mxu0 }
  0xee   : > { %490 = vst.msk [vmem:[%s776_s10 + $0x40] sm:$0xff] %vm481_vm4, %v473_v45  ;;  %v459_v51 = vadd.f32 %v763_v24, %v436_v47  ;;  %v632_v53 = vpop.f32.mrb[4].mxu1  ;;  %v468_v54 = vmax.f32 %v452_v48, 0.0  ;;  %v431_v56 = vmul.f32 %v620_v52, %v758_v22  ;;  %v360_v58 = vpop.f32.mrb[5].mxu0 }
  0xef   : > { %v476_v55 = vmax.f32 %v460_v49, 0.0  ;;  %v439_v57 = vmul.f32 %v632_v53, %v758_v22  ;;  %v400_v59 = vpop.f32.mrb[5].mxu1  ;;  %v467_v60 = vmax.f32 %v451_v50, 0.0  ;;  %v430_v62 = vmul.f32 %v758_v22, %v360_v58 }
  0xf0   : > { %v475_v61 = vmax.f32 %v459_v51, 0.0  ;;  %v438_v63 = vmul.f32 %v758_v22, %v400_v59  ;;  %485 = vst.msk [vmem:[%s776_s10 + $0x18] sm:$0xff] %vm481_vm4, %v468_v54  ;;  %v454_v0 = vadd.f32 %v763_v24, %v431_v56 }
  0xf1   : > { %493 = vst.msk [vmem:[%s776_s10 + $0x58] sm:$0xff] %vm481_vm4, %v476_v55  ;;  %v462_v1 = vadd.f32 %v763_v24, %v439_v57  ;;  %484 = vst.msk [vmem:[%s776_s10 + $0x10] sm:$0xff] %vm481_vm4, %v467_v60  ;;  %v453_v2 = vadd.f32 %v763_v24, %v430_v62  ;;  %v623_v4 = vpop.f32.mrb[6].mxu0 }
  0xf2   : > { %492 = vst.msk [vmem:[%s776_s10 + $0x50] sm:$0xff] %vm481_vm4, %v475_v61  ;;  %v461_v3 = vadd.f32 %v763_v24, %v438_v63  ;;  %v635_v5 = vpop.f32.mrb[6].mxu1  ;;  %v470_v6 = vmax.f32 %v454_v0, 0.0  ;;  %v433_v8 = vmul.f32 %v623_v4, %v758_v22  ;;  %v370_v10 = vpop.f32.mrb[7].mxu0 }
  0xf3   : > { %v478_v7 = vmax.f32 %v462_v1, 0.0  ;;  %v441_v9 = vmul.f32 %v635_v5, %v758_v22  ;;  %v410_v11 = vpop.f32.mrb[7].mxu1  ;;  %v469_v12 = vmax.f32 %v453_v2, 0.0  ;;  %v432_v14 = vmul.f32 %v758_v22, %v370_v10 }
  0xf4   : > { %v477_v13 = vmax.f32 %v461_v3, 0.0  ;;  %v440_v15 = vmul.f32 %v758_v22, %v410_v11  ;;  %487 = vst.msk [vmem:[%s776_s10 + $0x28] sm:$0xff] %vm481_vm4, %v470_v6  ;;  %v456_v16 = vadd.f32 %v763_v24, %v433_v8 }
  0xf5   : > { %495 = vst.msk [vmem:[%s776_s10 + $0x68] sm:$0xff] %vm481_vm4, %v478_v7  ;;  %v464_v17 = vadd.f32 %v763_v24, %v441_v9  ;;  %486 = vst.msk [vmem:[%s776_s10 + $0x20] sm:$0xff] %vm481_vm4, %v469_v12  ;;  %v455_v18 = vadd.f32 %v763_v24, %v432_v14 }
  0xf6   : > { %494 = vst.msk [vmem:[%s776_s10 + $0x60] sm:$0xff] %vm481_vm4, %v477_v13  ;;  %v463_v19 = vadd.f32 %v763_v24, %v440_v15  ;;  %v472_v20 = vmax.f32 %v456_v16, 0.0 }
  0xf7   : > { %v480_v21 = vmax.f32 %v464_v17, 0.0  ;;  %v471_v22 = vmax.f32 %v455_v18, 0.0 }
  0xf8   : > { %v479_v23 = vmax.f32 %v463_v19, 0.0  ;;  %489 = vst.msk [vmem:[%s776_s10 + $0x38] sm:$0xff] %vm481_vm4, %v472_v20 }
  0xf9   : > { %497 = vst.msk [vmem:[%s776_s10 + $0x78] sm:$0xff] %vm481_vm4, %v480_v21  ;;  %488 = vst.msk [vmem:[%s776_s10 + $0x30] sm:$0xff] %vm481_vm4, %v471_v22 }
  0xfa   : > { %496 = vst.msk [vmem:[%s776_s10 + $0x70] sm:$0xff] %vm481_vm4, %v479_v23 }
  0xfb PF: > { %s14_s15 = sadd.s32 1, %s665_s15  }
  0xfc   : > { %p11_p4 = scmp.ge.s32.totalorder %s14_s15, 18  }
  0xfe   :  { %13 = sbr.rel (!%p11_p4) target bundleno = 1 (0x1), region = 66 }

</bundles_post_ra>
